<compile_context>
chip_gen: v7x
topology: tpu7x:2x2x1
jax: 0.10.0
libtpu: 0.0.40
codegen_flags: <defaults>
</compile_context>

<pallas_src>
import jax
import jax.numpy as jnp
from jax.experimental import pallas as pl
from jax.experimental.pallas import tpu as pltpu


def _round_up(x, m):
    return ((x + m - 1) // m) * m


def _flinear_kernel(xr_ref, xi_ref, wrt_ref, wit_ref, br_ref, bi_ref,
                    yr_ref, yi_ref):
    """Four MXU half-matmuls for one (row-tile, col-tile) output block.

    xr_ref, xi_ref : (tile_m, F_pad)    real / imag of rfft(x), bf16 or f32
    wrt_ref, wit_ref: (F_pad, tile_n)   Wr^T / Wi^T column slab, bf16 or f32
    br_ref, bi_ref : (1, tile_n)        real / imag bias, f32
    yr_ref, yi_ref : (tile_m, tile_n)   real / imag output (compute dtype)
    """
    xr = xr_ref[...]
    xi = xi_ref[...]
    wrt = wrt_ref[...]
    wit = wit_ref[...]
    yr = (jnp.dot(xr, wrt, preferred_element_type=jnp.float32)
          - jnp.dot(xi, wit, preferred_element_type=jnp.float32))
    yi = (jnp.dot(xr, wit, preferred_element_type=jnp.float32)
          + jnp.dot(xi, wrt, preferred_element_type=jnp.float32))
    yr_ref[...] = (yr + br_ref[...]).astype(yr_ref.dtype)
    yi_ref[...] = (yi + bi_ref[...]).astype(yi_ref.dtype)


def _choose_tiles(n_rows, f_pad, in_itemsize, out_itemsize, budget):
    """Pick (tile_m, tile_n, n_pad, f_out_pad) under a VMEM byte budget."""
    # Column tile: shrink until the double-buffered Wr^T+Wi^T slab uses
    # <= ~half the budget (large-d_model / v7x case).
    tile_n = f_pad
    while tile_n > 128 and 4 * f_pad * tile_n * in_itemsize > budget // 2:
        tile_n = _round_up(max(128, tile_n // 2), 128)
    f_out_pad = _round_up(f_pad, tile_n)

    # Row tile: bigger rows when the frequency dim is small (memory-bound
    # regime; amortizes the ~0.35us per-grid-step overhead).
    tile_m = 512 if f_pad <= 512 else 256
    tile_m = max(8, min(tile_m, _round_up(n_rows, 8)))
    w_bytes = 4 * f_pad * tile_n * in_itemsize
    while tile_m > 8 and (4 * tile_m * f_pad * in_itemsize
                          + 4 * tile_m * tile_n * out_itemsize) > budget - w_bytes:
        tile_m = max(8, _round_up(tile_m // 2, 8))

    n_pad = _round_up(n_rows, tile_m)
    # v7x megacore balance: keep >= 2 parallel grid steps when possible.
    if n_pad // tile_m == 1 and f_out_pad // tile_n == 1 and n_pad >= 16:
        tile_m = _round_up(max(8, n_pad // 2), 8)
        n_pad = _round_up(n_rows, tile_m)
    return tile_m, tile_n, n_pad, f_out_pad


def _complex_linear_pallas(xr, xi, wrt, wit, br, bi, *,
                           tile_m, tile_n, out_dtype, vmem_cap):
    """xr/xi: (N_pad, F_pad); wrt/wit: (F_pad, F_out_pad); br/bi: (1, F_out_pad).
    Returns (yr, yi): (N_pad, F_out_pad) in out_dtype."""
    n_pad, f_pad = xr.shape
    f_out_pad = wrt.shape[1]
    assert n_pad % tile_m == 0 and f_out_pad % tile_n == 0

    in_itemsize = jnp.dtype(xr.dtype).itemsize
    out_itemsize = jnp.dtype(out_dtype).itemsize

    # Grid: output-column tiles outer, row tiles inner -> each weight column
    # slab is DMA'd once and reused across all row tiles.
    grid = (f_out_pad // tile_n, n_pad // tile_m)

    x_spec = pl.BlockSpec((tile_m, f_pad), lambda j, i: (i, 0))
    w_spec = pl.BlockSpec((f_pad, tile_n), lambda j, i: (0, j))
    b_spec = pl.BlockSpec((1, tile_n), lambda j, i: (0, j))
    y_spec = pl.BlockSpec((tile_m, tile_n), lambda j, i: (i, j))

    # VMEM accounting (pipeline double-buffers every operand).
    need = (4 * tile_m * f_pad * in_itemsize        # xr + xi tiles
            + 4 * f_pad * tile_n * in_itemsize      # Wr^T + Wi^T slabs
            + 4 * tile_m * tile_n * out_itemsize    # yr + yi tiles
            + 4 * 8 * tile_n * 4)                   # biases (sublane-padded)
    vmem_limit = max(int(need * 1.5) + (4 << 20), 32 << 20)
    vmem_limit = min(vmem_limit, vmem_cap - (8 << 20))

    cost = pl.CostEstimate(
        flops=8 * n_pad * f_pad * f_out_pad,
        transcendentals=0,
        bytes_accessed=(2 * n_pad * f_pad * in_itemsize          # xr, xi in
                        + 2 * f_pad * f_out_pad * in_itemsize    # Wr^T, Wi^T in
                        + 2 * f_out_pad * 4                      # biases in
                        + 2 * n_pad * f_out_pad * out_itemsize)) # yr, yi out

    return pl.pallas_call(
        _flinear_kernel,
        out_shape=(jax.ShapeDtypeStruct((n_pad, f_out_pad), out_dtype),
                   jax.ShapeDtypeStruct((n_pad, f_out_pad), out_dtype)),
        grid_spec=pltpu.PrefetchScalarGridSpec(
            num_scalar_prefetch=0,
            grid=grid,
            in_specs=[x_spec, x_spec, w_spec, w_spec, b_spec, b_spec],
            out_specs=[y_spec, y_spec],
        ),
        compiler_params=pltpu.CompilerParams(
            dimension_semantics=("parallel", "parallel"),
            vmem_limit_bytes=vmem_limit),
        cost_estimate=cost,
    )(xr, xi, wrt, wit, br, bi)


def flinear_forward(x, wr, wi, br, bi, *, use_bf16=True):
    """Full FLinear forward.

    x : (B, L, d_model) float32
    wr, wi : (F, F) float32  (real / imag of the complex Linear weight)
    br, bi : (F,)   float32  (real / imag of the complex Linear bias)
    F = d_model // 2 + 1.
    use_bf16: bf16 MXU operands + bf16 kernel output, f32 accumulation
              (default; ~3x MXU throughput, ~half the x/y HBM bytes).
    Returns x_hat : (B, L, d_model) float32
    """
    B, L, d_model = x.shape
    F = d_model // 2 + 1
    f_pad = _round_up(F, 128)          # lane-dense frequency dim
    N = B * L

    compute_dtype = jnp.bfloat16 if use_bf16 else jnp.float32
    out_dtype = compute_dtype
    in_itemsize = jnp.dtype(compute_dtype).itemsize
    out_itemsize = jnp.dtype(out_dtype).itemsize

    # Generation-aware VMEM capacity (v5e/v6e 128 MiB, v7x 64 MiB per TC).
    try:
        vmem_cap = int(pltpu.get_tpu_info().vmem_capacity_bytes)
    except Exception:
        vmem_cap = 64 << 20
    budget = int(vmem_cap * 0.7)

    tile_m, tile_n, n_pad, f_out_pad = _choose_tiles(
        N, f_pad, in_itemsize, out_itemsize, budget)

    x_fft = jnp.fft.rfft(x.astype(jnp.float32), axis=-1)      # (B, L, F) c64
    xr = jnp.real(x_fft).reshape(N, F)
    xi = jnp.imag(x_fft).reshape(N, F)
    # Pad rows to the grid and the frequency dim to a lane multiple; padded x
    # columns are zero and padded W rows are zero, so the result is exact.
    xr_p = jnp.pad(xr, ((0, n_pad - N), (0, f_pad - F))).astype(compute_dtype)
    xi_p = jnp.pad(xi, ((0, n_pad - N), (0, f_pad - F))).astype(compute_dtype)

    wrt_p = jnp.pad(wr.T, ((0, f_pad - F), (0, f_out_pad - F))).astype(compute_dtype)
    wit_p = jnp.pad(wi.T, ((0, f_pad - F), (0, f_out_pad - F))).astype(compute_dtype)
    br_p = jnp.pad(br, (0, f_out_pad - F)).reshape(1, f_out_pad).astype(jnp.float32)
    bi_p = jnp.pad(bi, (0, f_out_pad - F)).reshape(1, f_out_pad).astype(jnp.float32)

    yr, yi = _complex_linear_pallas(xr_p, xi_p, wrt_p, wit_p, br_p, bi_p,
                                    tile_m=tile_m, tile_n=tile_n,
                                    out_dtype=out_dtype, vmem_cap=vmem_cap)

    y_fft = (yr[:N, :F].astype(jnp.float32)
             + 1j * yi[:N, :F].astype(jnp.float32)).astype(jnp.complex64)
    y_fft = y_fft.reshape(B, L, F)
    x_hat = jnp.fft.irfft(y_fft, n=d_model, axis=-1)           # (B, L, d_model)
    return x_hat.astype(jnp.float32)


def flinear_reference(x, wr, wi, br, bi):
    """Pure-JAX reference mirroring the PyTorch module exactly."""
    d_model = x.shape[-1]
    w = (wr + 1j * wi).astype(jnp.complex64)
    b = (br + 1j * bi).astype(jnp.complex64)
    x_fft = jnp.fft.rfft(x.astype(jnp.float32), axis=-1)
    x_fft_hat = jnp.einsum("blf,gf->blg", x_fft, w) + b        # Linear: x @ W^T + b
    return jnp.fft.irfft(x_fft_hat, n=d_model, axis=-1).astype(jnp.float32)


if __name__ == "__main__":
    key = jax.random.PRNGKey(0)
    B, L, d_model = 2, 8, 32
    F = d_model // 2 + 1                                       # 17

    k_x, k_wr, k_wi, k_br, k_bi = jax.random.split(key, 5)
    x = jax.random.normal(k_x, (B, L, d_model), dtype=jnp.float32)

    # Deterministic synthetic init of the complex Linear params (shape per
    # nn.Linear(F, F).to(torch.cfloat)): weight (F, F) complex, bias (F,) complex.
    scale = 1.0 / jnp.sqrt(jnp.float32(F))
    wr = scale * jax.random.normal(k_wr, (F, F), dtype=jnp.float32)
    wi = scale * jax.random.normal(k_wi, (F, F), dtype=jnp.float32)
    br = scale * jax.random.normal(k_br, (F,), dtype=jnp.float32)
    bi = scale * jax.random.normal(k_bi, (F,), dtype=jnp.float32)

    ref = jax.block_until_ready(flinear_reference(x, wr, wi, br, bi))

    # f32 operand path: tight tolerance vs reference.
    out_f32 = jax.block_until_ready(
        flinear_forward(x, wr, wi, br, bi, use_bf16=False))
    assert out_f32.shape == (B, L, d_model)
    assert out_f32.dtype == jnp.float32
    assert jnp.allclose(out_f32, ref, atol=1e-4, rtol=1e-4), "f32 mismatch vs reference"

    # Default bf16-operand path (f32 accumulation): looser tolerance.
    out_bf16 = jax.block_until_ready(flinear_forward(x, wr, wi, br, bi))
    assert out_bf16.shape == (B, L, d_model)
    assert out_bf16.dtype == jnp.float32
    assert jnp.allclose(out_bf16, ref, atol=5e-2, rtol=5e-2), "bf16 mismatch vs reference"

    print("KERNEL_OK")
</pallas_src>

<mosaic_0001>
module attributes {stable_mosaic.version = 11 : i64} {
  func.func @_flinear_kernel(%arg0: i32, %arg1: i32, %arg2: memref<8x128xf32, #tpu.memory_space<vmem>>, %arg3: memref<8x128xf32, #tpu.memory_space<vmem>>, %arg4: memref<128x128xf32, #tpu.memory_space<vmem>>, %arg5: memref<128x128xf32, #tpu.memory_space<vmem>>, %arg6: memref<1x128xf32, #tpu.memory_space<vmem>>, %arg7: memref<1x128xf32, #tpu.memory_space<vmem>>, %arg8: memref<8x128xf32, #tpu.memory_space<vmem>>, %arg9: memref<8x128xf32, #tpu.memory_space<vmem>>) attributes {dimension_semantics = [#tpu.dimension_semantics<parallel>, #tpu.dimension_semantics<parallel>], iteration_bounds = array<i64: 1, 2>, scalar_prefetch = 0 : i64, scratch_operands = 0 : i64, tpu.core_type = #tpu.core_type<tc>, window_params = [{transform_indices = @transform_0, window_bounds = array<i64: 8, 128>}, {transform_indices = @transform_1, window_bounds = array<i64: 8, 128>}, {transform_indices = @transform_2, window_bounds = array<i64: 128, 128>}, {transform_indices = @transform_3, window_bounds = array<i64: 128, 128>}, {transform_indices = @transform_4, window_bounds = array<i64: 1, 128>}, {transform_indices = @transform_5, window_bounds = array<i64: 1, 128>}, {transform_indices = @transform_6, window_bounds = array<i64: 8, 128>}, {transform_indices = @transform_7, window_bounds = array<i64: 8, 128>}]} {
    %c0 = arith.constant 0 : index
    %c0_0 = arith.constant 0 : index
    %0 = vector.load %arg2[%c0, %c0_0] : memref<8x128xf32, #tpu.memory_space<vmem>>, vector<8x128xf32>
    %c0_1 = arith.constant 0 : index
    %c0_2 = arith.constant 0 : index
    %1 = vector.load %arg3[%c0_1, %c0_2] : memref<8x128xf32, #tpu.memory_space<vmem>>, vector<8x128xf32>
    %c0_3 = arith.constant 0 : index
    %c0_4 = arith.constant 0 : index
    %2 = vector.load %arg4[%c0_3, %c0_4] : memref<128x128xf32, #tpu.memory_space<vmem>>, vector<128x128xf32>
    %c0_5 = arith.constant 0 : index
    %c0_6 = arith.constant 0 : index
    %3 = vector.load %arg5[%c0_5, %c0_6] : memref<128x128xf32, #tpu.memory_space<vmem>>, vector<128x128xf32>
    %cst = arith.constant dense<0.000000e+00> : vector<8x128xf32>
    %4 = tpu.matmul %0, %2, %cst {dimension_numbers = #tpu.dot_dimension_numbers<[1], [0], [0], [1], [0, 0, 1, 1], [], []>} : vector<8x128xf32>, vector<128x128xf32>, vector<8x128xf32> -> vector<8x128xf32>
    %cst_7 = arith.constant dense<0.000000e+00> : vector<8x128xf32>
    %5 = tpu.matmul %1, %3, %cst_7 {dimension_numbers = #tpu.dot_dimension_numbers<[1], [0], [0], [1], [0, 0, 1, 1], [], []>} : vector<8x128xf32>, vector<128x128xf32>, vector<8x128xf32> -> vector<8x128xf32>
    %6 = arith.subf %4, %5 : vector<8x128xf32>
    %cst_8 = arith.constant dense<0.000000e+00> : vector<8x128xf32>
    %7 = tpu.matmul %0, %3, %cst_8 {dimension_numbers = #tpu.dot_dimension_numbers<[1], [0], [0], [1], [0, 0, 1, 1], [], []>} : vector<8x128xf32>, vector<128x128xf32>, vector<8x128xf32> -> vector<8x128xf32>
    %cst_9 = arith.constant dense<0.000000e+00> : vector<8x128xf32>
    %8 = tpu.matmul %1, %2, %cst_9 {dimension_numbers = #tpu.dot_dimension_numbers<[1], [0], [0], [1], [0, 0, 1, 1], [], []>} : vector<8x128xf32>, vector<128x128xf32>, vector<8x128xf32> -> vector<8x128xf32>
    %9 = arith.addf %7, %8 : vector<8x128xf32>
    %c0_10 = arith.constant 0 : index
    %c0_11 = arith.constant 0 : index
    %10 = vector.load %arg6[%c0_10, %c0_11] : memref<1x128xf32, #tpu.memory_space<vmem>>, vector<1x128xf32>
    %11 = vector.broadcast %10 : vector<1x128xf32> to vector<8x128xf32>
    %12 = arith.addf %6, %11 : vector<8x128xf32>
    %c0_12 = arith.constant 0 : index
    %c0_13 = arith.constant 0 : index
    %13 = vector.load %arg8[%c0_12, %c0_13] : memref<8x128xf32, #tpu.memory_space<vmem>>, vector<8x128xf32>
    tpu.vector_store %arg8[%c0_12, %c0_13], %12 {strides = array<i32>} : memref<8x128xf32, #tpu.memory_space<vmem>>, vector<8x128xf32>,
    %c0_14 = arith.constant 0 : index
    %c0_15 = arith.constant 0 : index
    %14 = vector.load %arg7[%c0_14, %c0_15] : memref<1x128xf32, #tpu.memory_space<vmem>>, vector<1x128xf32>
    %15 = vector.broadcast %14 : vector<1x128xf32> to vector<8x128xf32>
    %16 = arith.addf %9, %15 : vector<8x128xf32>
    %c0_16 = arith.constant 0 : index
    %c0_17 = arith.constant 0 : index
    %17 = vector.load %arg9[%c0_16, %c0_17] : memref<8x128xf32, #tpu.memory_space<vmem>>, vector<8x128xf32>
    tpu.vector_store %arg9[%c0_16, %c0_17], %16 {strides = array<i32>} : memref<8x128xf32, #tpu.memory_space<vmem>>, vector<8x128xf32>,
    return
  }
  func.func @transform_0(%arg0: i32, %arg1: i32) -> (i32, i32) {
    %c0_i32 = arith.constant 0 : i32
    %c0_i32_0 = arith.constant 0 : i32
    return %arg1, %c0_i32 : i32, i32
  }
  func.func @transform_1(%arg0: i32, %arg1: i32) -> (i32, i32) {
    %c0_i32 = arith.constant 0 : i32
    %c0_i32_0 = arith.constant 0 : i32
    return %arg1, %c0_i32 : i32, i32
  }
  func.func @transform_2(%arg0: i32, %arg1: i32) -> (i32, i32) {
    %c0_i32 = arith.constant 0 : i32
    %c0_i32_0 = arith.constant 0 : i32
    return %c0_i32, %arg0 : i32, i32
  }
  func.func @transform_3(%arg0: i32, %arg1: i32) -> (i32, i32) {
    %c0_i32 = arith.constant 0 : i32
    %c0_i32_0 = arith.constant 0 : i32
    return %c0_i32, %arg0 : i32, i32
  }
  func.func @transform_4(%arg0: i32, %arg1: i32) -> (i32, i32) {
    %c0_i32 = arith.constant 0 : i32
    %c0_i32_0 = arith.constant 0 : i32
    return %c0_i32, %arg0 : i32, i32
  }
  func.func @transform_5(%arg0: i32, %arg1: i32) -> (i32, i32) {
    %c0_i32 = arith.constant 0 : i32
    %c0_i32_0 = arith.constant 0 : i32
    return %c0_i32, %arg0 : i32, i32
  }
  func.func @transform_6(%arg0: i32, %arg1: i32) -> (i32, i32) {
    %c0_i32 = arith.constant 0 : i32
    return %arg1, %arg0 : i32, i32
  }
  func.func @transform_7(%arg0: i32, %arg1: i32) -> (i32, i32) {
    %c0_i32 = arith.constant 0 : i32
    return %arg1, %arg0 : i32, i32
  }
}

</mosaic_0001>

<bundles_post_ra>
// kernel: tpu_custom_call.1
= control target key start
LH: loop header
LB: loop body
LE: loop exit
PB: predicated region body
PF: predicated region fallthrough
CT: control target
= control target key end

     0   :  { %s2107_s0 = inlined_call_operand.hbm [shape: f32[16,128], index: 0, kind: input, shape index: {}]   ;;  %s2108_s1 = inlined_call_operand.hbm [shape: f32[16,128], index: 1, kind: input, shape index: {}]   ;;  %s2109_s2 = inlined_call_operand.hbm [shape: f32[128,128], index: 2, kind: input, shape index: {}]   ;;  %s2110_s3 = inlined_call_operand.hbm [shape: f32[128,128], index: 3, kind: input, shape index: {}]   ;;  %s2111_s4 = inlined_call_operand.vmem [shape: f32[1,128], index: 4, kind: input, shape index: {}]   ;;  %s2112_s5 = inlined_call_operand.vmem [shape: f32[1,128], index: 5, kind: input, shape index: {}]   ;;  %s2113_s6 = inlined_call_operand.hbm [shape: f32[16,128], index: 6, kind: output, shape index: {0}]   ;;  %s2114_s7 = inlined_call_operand.hbm [shape: f32[16,128], index: 7, kind: output, shape index: {1}]  }
   0x1   :  { %2122 = sst [smem:[#allocation23_spill]] %s2109_s2 }
   0x2   :  { %2123 = sst [smem:[#allocation24_spill]] %s2110_s3 }
   0x3   :  { %13 = vsyncpa [#allocation3], 0 }
   0x4   :  { %15 = vsyncpa [#allocation3 + $0x1], 0 }
   0x5   :  { %16 = vsyncpa [#allocation6], 0 }
   0x6   :  { %18 = vsyncpa [#allocation6 + $0x1], 0 }
   0x7   :  { %19 = vsyncpa [#allocation9], 0 }
   0x8   :  { %20 = vsyncpa [#allocation4], 0 }
   0x9   :  { %22 = vsyncpa [#allocation4 + $0x1], 0 }
   0xa   :  { %23 = vsyncpa [#allocation12], 0 }
   0xb   :  { %25 = vsyncpa [#allocation12 + $0x1], 0  ;;  %s1702_s24 = smov 0   ;;  %s1704_s25 = smov 0  }
   0xc   :  { %s1706_s26 = smov 0   ;;  %s1708_s27 = smov 0  }
   0xd   :  { %s1710_s28 = smov 0   ;;  %s1712_s29 = smov 0  }
   0xe LB: > { %2124 = sst [smem:[#allocation19_spill]] %s1645_s28  ;;  %s1733_s30 = sadd.s32 4294967295, %s1649_s29   ;;  %s1649_s29 = sphi %s1712_s29, %s31_s29   ;;  %s1645_s28 = sphi %s1710_s28, %s2149_s28   ;;  %s1641_s27 = sphi %s1708_s27, %s2148_s27   ;;  %s1637_s26 = sphi %s1706_s26, %s2152_s26   ;;  %s1633_s25 = sphi %s1704_s25, %s2151_s25   ;;  %s1629_s24 = sphi %s1702_s24, %s2150_s24  }
   0xf   : > { %s979_s8 = sadd.s32 4294967294, %s1649_s29   ;;  %p63_p0 = scmp.ne.s32.totalorder %s1633_s25, %s1629_s24 }
  0x10   : > { %p2115_p1 = scmp.eq.s32.totalorder %s1733_s30, 0  ;;  %p225_p3 = scmp.eq.s32.totalorder %s979_s8, 1 }
  0x11   : > { %p980_p5 = scmp.ge.s32.totalorder %s1649_s29, 1  ;;  %p260_p7 = scmp.lt.s32.totalorder %s1649_s29, 3 }
  0x12   : > { %p1742_p4 = por %p2115_p1, %p63_p0  ;;  %p1747_p6 = por %p225_p3, %p63_p0 }
  0x13   : > { %p1752_p8 = pnand %p980_p5, %p260_p7  ;;  %s1651_s12 = smov [#allocation7]  }
  0x14   : > { %s2125_s9 = scalar_select %p1742_p4, 1, 0 }
  0x15   : > { %s2126_s10 = scalar_select %p1747_p6, 1, 0 }
  0x16   : > { %s2128_s11 = scalar_select %p1752_p8, 1, 0 }
  0x17   : > { %2127 = sst [smem:[#allocation20_spill]] %s2126_s10  ;;  %s274_s13 = sshll.u32 %s1651_s12, 4  ;;  %s1756_s13 = int_to_ptr.vmem [resolvable:$true] %s274_s13 }
  0x18   : > { %p1325_p9 = pneg %p1752_p8  ;;  %s1652_s15 = smov [#allocation8]  }
  0x19   : > { %s289_s16 = sshll.u32 %s1652_s15, 4  ;;  %s2130_s2 = sld [smem:[#allocation23_spill]]  ;;  %s1767_s16 = int_to_ptr.vmem [resolvable:$true] %s289_s16 }
  0x1a   : > { %p1763_p11 = pnand %p1325_p9, %p2115_p1 }
  0x1c   : > { %p1409_p13 = pneg %p1763_p11 }
  0x1f   : > { %s1407_s19 = scalar_lea.hbm %s2130_s2, 2048 }
  0x20   : > { %p1408_p12 = scmp.ne.s32.totalorder %s2130_s2, %s1407_s19  ;;  %p1414_p5 = scmp.lt.u32.totalorder %s1407_s19, %s2130_s2 }
  0x22   : > { %p1410_p0 = pnand %p1409_p13, %p1408_p12 }
  0x24   : > { %p1411_p3 = pneg %p1410_p0 }
  0x26   : > { %p1416_p7 = pnand %p1414_p5, %p1411_p3 }
  0x28   : > { %1419 = shalt.err (!%p1416_p7)
}
  0x29   : > { %s1420_s8 = scalar_lea.vmem %s1756_s13, 2048  ;;  %p1428_p2 = scmp.lt.s32.totalorder %s1756_s13, %s1756_s13 }
  0x2a   : > { %p1421_p9 = scmp.ne.s32.totalorder %s1756_s13, %s1420_s8  ;;  %p1429_p12 = scmp.lt.s32.totalorder %s1420_s8, %s1420_s8 }
  0x2c   : > { %p1423_p10 = pnand %p1421_p9, %p1409_p13  ;;  %p1430_p0 = por %p1429_p12, %p1428_p2 }
  0x2e   : > { %p1424_p1 = pneg %p1423_p10 }
  0x30   : > { %p1431_p6 = pnand %p1430_p0, %p1424_p1 }
  0x32   : > { %1434 = shalt.err (!%p1431_p6)
}
  0x33   : > { %s1653_s12 = smov 128   ;;  %s1654_s15 = smov 8  }
  0x34   : > { %1328 = dma.hbm_to_vmem [thread:$0]  (!%p1763_p11), %s2130_s2, 2048, %s1756_s13, [#allocation6], %s1653_s12, %s1653_s12, %s1654_s15  }
  0x35   : > { %s2131_s3 = sld [smem:[#allocation24_spill]] }
  0x3b   : > { %s1435_s21 = scalar_lea.hbm %s2131_s3, 2048 }
  0x3c   : > { %p1436_p2 = scmp.ne.s32.totalorder %s2131_s3, %s1435_s21  ;;  %p1442_p10 = scmp.lt.u32.totalorder %s1435_s21, %s2131_s3 }
  0x3e   : > { %p1438_p1 = pnand %p1436_p2, %p1409_p13 }
  0x40   : > { %p1439_p6 = pneg %p1438_p1 }
  0x42   : > { %p1444_p3 = pnand %p1442_p10, %p1439_p6 }
  0x44   : > { %1447 = shalt.err (!%p1444_p3)
}
  0x45   : > { %s1448_s13 = scalar_lea.vmem %s1767_s16, 2048  ;;  %p1456_p12 = scmp.lt.s32.totalorder %s1767_s16, %s1767_s16 }
  0x46   : > { %p1449_p5 = scmp.ne.s32.totalorder %s1767_s16, %s1448_s13  ;;  %p1457_p0 = scmp.lt.s32.totalorder %s1448_s13, %s1448_s13 }
  0x48   : > { %p1451_p7 = pnand %p1449_p5, %p1409_p13  ;;  %p1458_p2 = por %p1457_p0, %p1456_p12 }
  0x4a   : > { %p1452_p9 = pneg %p1451_p7 }
  0x4c   : > { %p1459_p1 = pnand %p1458_p2, %p1452_p9 }
  0x4e   : > { %1462 = shalt.err (!%p1459_p1)
}
  0x4f   : > { %1331 = dma.hbm_to_vmem [thread:$0]  (!%p1763_p11), %s2131_s3, 2048, %s1767_s16, [#allocation9], %s1653_s12, %s1653_s12, %s1654_s15  }
  0x50   : > { %s40_s18 = sadd.s32 1, %s1645_s28  ;;  %s50_s19 = sadd.s32 1, %s1637_s26 }
  0x51   : > { %p41_p13 = scmp.ge.s32.totalorder %s40_s18, 2  ;;  %p57_p6 = scmp.ne.s32.totalorder %s1637_s26, %s1633_s25 }
  0x52   : > { %p58_p10 = scmp.eq.s32.totalorder %s1649_s29, 0  ;;  %p1348_p3 = scmp.lt.s32.totalorder %s1649_s29, 2 }
  0x53   : > { %s2154_s18 = smov (%p41_p13, %s40_s18), 0  ;;  %p2133_p7 = scmp.eq.s32.totalorder %s1733_s30, 1 }
  0x54   : > { %2132 = sst [smem:[#allocation21_spill]] %s2154_s18  ;;  %p59_p5 = por %p58_p10, %p57_p6 }
  0x55   : > { %p1831_p9 = por %p2133_p7, %p57_p6  ;;  %s47_s20 = ssub.s32 %s1645_s28, %s2154_s18 }
  0x56   : > { %s315_s21 = sand.u32 1, %s1637_s26   ;;  %p48_p12 = scmp.eq.s32.totalorder %s47_s20, 0 }
  0x57   : > { %s2134_s14 = scalar_select %p1831_p9, 1, 0 }
  0x58   : > { %s1838_s16 = sshll.u32 %s315_s21, 3  ;;  %s987_s12 = sshll.u32 %s1645_s28, 7 }
  0x59   : > { %s1842_s15 = scalar_select %p48_p12, %s1637_s26, %s50_s19  }
  0x5a   : > { %s1847_s8 = scalar_lea.hbm %s2107_s0, %s987_s12  ;;  %s319_s13 = scalar_lea.vmem [#allocation2], %s1838_s16 }
  0x5b   : > { %2135 = sst [smem:[#allocation22_spill]] %s1842_s15  ;;  %s326_s10 = sshll.u32 %s319_s13, 4  ;;  %s1856_s10 = int_to_ptr.vmem [resolvable:$true] %s326_s10 }
  0x5c   : > { %p1852_p11 = pnand %p1348_p3, %p59_p5  ;;  %s1861_s22 = scalar_lea.hbm %s2108_s1, %s987_s12 }
  0x5d   : > { %s316_s23 = scalar_lea.sflag [#allocation3], %s315_s21  ;;  %s1463_s2 = scalar_lea.hbm %s1847_s8, 128 }
  0x5e   : > { %p1464_p0 = scmp.ne.s32.totalorder %s1847_s8, %s1463_s2  ;;  %p1465_p2 = pneg %p1852_p11 }
  0x5f   : > { %s1468_s18 = scalar_lea.hbm %s2107_s0, 256  ;;  %p1469_p6 = scmp.lt.u32.totalorder %s1847_s8, %s2107_s0 }
  0x60   : > { %p1466_p1 = pnand %p1465_p2, %p1464_p0  ;;  %p1470_p10 = scmp.lt.u32.totalorder %s1468_s18, %s1463_s2 }
  0x61   : > { %p1472_p5 = scmp.lt.u32.totalorder %s1463_s2, %s1847_s8 }
  0x62   : > { %p1467_p13 = pneg %p1466_p1  ;;  %p1471_p3 = por %p1470_p10, %p1469_p6 }
  0x64   : > { %p1473_p7 = por %p1472_p5, %p1471_p3 }
  0x66   : > { %p1474_p12 = pnand %p1473_p7, %p1467_p13 }
  0x68   : > { %1477 = shalt.err (!%p1474_p12)
}
  0x69   : > { %s1478_s21 = scalar_lea.vmem %s1856_s10, 128  ;;  %s1655_s3 = smov [#allocation2]  }
  0x6a   : > { %p1479_p0 = scmp.ne.s32.totalorder %s1856_s10, %s1478_s21  ;;  %s1483_s12 = sshll.u32 %s1655_s3, 4  ;;  %s1484_s12 = int_to_ptr.vmem [resolvable:$false] %s1483_s12 }
  0x6b   : > { %s1485_s28 = scalar_lea.vmem %s1484_s12, 256  ;;  %p1486_p4 = scmp.lt.s32.totalorder %s1856_s10, %s1484_s12 }
  0x6c   : > { %p1481_p1 = pnand %p1479_p0, %p1465_p2  ;;  %p1487_p6 = scmp.lt.s32.totalorder %s1485_s28, %s1478_s21 }
  0x6e   : > { %p1482_p9 = pneg %p1481_p1  ;;  %p1488_p10 = por %p1487_p6, %p1486_p4 }
  0x70   : > { %p1489_p3 = pnand %p1488_p10, %p1482_p9 }
  0x72   : > { %1492 = shalt.err (!%p1489_p3)
}
  0x73   : > { %1335 = dma.hbm_to_vmem [thread:$0]  (!%p1852_p11), %s1847_s8, 128, %s1856_s10, %s316_s23  }
  0x74   : > { %s333_s2 = sand.u32 1, %s1649_s29   ;;  %s337_s18 = scalar_lea.vmem [#allocation5], %s1838_s16 }
  0x75   : > { %s344_s15 = sshll.u32 %s337_s18, 4  ;;  %s334_s19 = scalar_lea.sflag [#allocation6], %s333_s2  ;;  %s345_s15 = int_to_ptr.vmem [resolvable:$true] %s344_s15 }
  0x76   : > { %s1493_s20 = scalar_lea.hbm %s1861_s22, 128  ;;  %s1498_s3 = scalar_lea.hbm %s2108_s1, 256 }
  0x77   : > { %p1494_p4 = scmp.ne.s32.totalorder %s1861_s22, %s1493_s20  ;;  %p1499_p5 = scmp.lt.u32.totalorder %s1861_s22, %s2108_s1 }
  0x78   : > { %p1500_p7 = scmp.lt.u32.totalorder %s1498_s3, %s1493_s20  ;;  %p1502_p0 = scmp.lt.u32.totalorder %s1493_s20, %s1861_s22 }
  0x79   : > { %p1496_p9 = pnand %p1494_p4, %p1465_p2 }
  0x7a   : > { %p1501_p12 = por %p1500_p7, %p1499_p5 }
  0x7b   : > { %p1497_p13 = pneg %p1496_p9 }
  0x7c   : > { %p1503_p1 = por %p1502_p0, %p1501_p12 }
  0x7e   : > { %p1504_p6 = pnand %p1503_p1, %p1497_p13 }
  0x80   : > { %1507 = shalt.err (!%p1504_p6)
}
  0x81   : > { %s1508_s16 = scalar_lea.vmem %s345_s15, 128  ;;  %s1656_s8 = smov [#allocation5]  }
  0x82   : > { %p1509_p10 = scmp.ne.s32.totalorder %s345_s15, %s1508_s16  ;;  %s1513_s10 = sshll.u32 %s1656_s8, 4  ;;  %s1514_s10 = int_to_ptr.vmem [resolvable:$false] %s1513_s10 }
  0x83   : > { %s1515_s23 = scalar_lea.vmem %s1514_s10, 256  ;;  %p1516_p9 = scmp.lt.s32.totalorder %s345_s15, %s1514_s10 }
  0x84   : > { %p1511_p3 = pnand %p1509_p10, %p1465_p2  ;;  %p1517_p8 = scmp.lt.s32.totalorder %s1515_s23, %s1508_s16 }
  0x86   : > { %p1512_p4 = pneg %p1511_p3  ;;  %p1518_p5 = por %p1517_p8, %p1516_p9 }
  0x88   : > { %p1519_p7 = pnand %p1518_p5, %p1512_p4 }
  0x8a   : > { %1522 = shalt.err (!%p1519_p7)
}
  0x8b   : > { %1338 = dma.hbm_to_vmem [thread:$0]  (!%p1852_p11), %s1861_s22, 128, %s345_s15, %s334_s19  }
  0x8c   : > { %p2137_p13 = scmp.ne.s32.totalorder %s2128_s11, 0 }
  0x8d   : > { %s1912_s2 = sand.u32 (!%p2137_p13), 1, %s1633_s25   ;;  %p2138_p8 = scmp.ne.s32.totalorder (!%p2137_p13), %s2125_s9, 0 }
  0x8e   : > { %353 = sbr.rel (%p2137_p13) target bundleno = 458 (0x1ca), region = 44  ;;  %s1915_s18 = sshll.u32 (!%p2137_p13), %s1912_s2, 3 }
  0x8f   : > { %s356_s20 = scalar_lea.sflag (!%p2137_p13), [#allocation3], %s1912_s2  ;;  %s359_s13 = scalar_lea.vmem (!%p2137_p13), [#allocation2], %s1915_s18 }
  0x95   : > { %1604 = dma.done.wait (%p2138_p8), %s356_s20, 128  }
  0x96   : > { %1606 = vsyncadd (%p2138_p8), %s356_s20, 4294967168  ;;  %s364_s11 = sand.u32 1, %s1733_s30   ;;  %s368_s22 = scalar_lea.vmem [#allocation5], %s1915_s18 }
  0x97   : > { %s365_s17 = scalar_lea.sflag [#allocation6], %s364_s11 }
  0x98   : > { %1608 = dma.done.wait (%p2138_p8), %s365_s17, 128  }
  0x99   : > { %1610 = vsyncadd (%p2138_p8), %s365_s17, 4294967168  ;;  %p2139_p11 = scmp.eq.s32.totalorder %s1733_s30, 0 }
  0x9b   : > { %1612 = dma.done.wait (%p2139_p11), [#allocation6], 2048   ;;  %p2140_p2 = pmov %p2139_p11 }
  0x9d   : > { %1614 = vsyncadd (%p2140_p2), [#allocation6], 4294965248  ;;  %p2141_p12 = pmov %p2140_p2 }
  0x9e   : > { %p2142_p0 = pmov %p2140_p2 }
  0x9f   : > { %1616 = dma.done.wait (%p2141_p12), [#allocation9], 2048  }
  0xa0   : > { %1618 = vsyncadd (%p2142_p0), [#allocation9], 4294965248  ;;  %v1657_v0 = vmov 0.0|0.0   ;;  %vm1658_vm0 = vmmov 0   ;;  %v1659_v1 = vmov 0.0   ;;  %v431_v2 = vld [vmem:[#allocation7] sm:$0xff] }
  0xa1   : > { %1213 = vmatprep.subr.bf16.mxu0 %v1657_v0  ;;  %1237 = vmatprep.subr.bf16.mxu1 %v1657_v0  ;;  %v432_v3 = vld [vmem:[#allocation7 + $0x8] sm:$0xff]  ;;  %v447_v4 = vld [vmem:[#allocation8] sm:$0xff]  ;;  %v433_v7 = vld [vmem:[#allocation7 + $0x10] sm:$0xff]  ;;  %s1001_s15 = sshll.u32 %s1641_s27, 7  ;;  %s415_s19 = scalar_lea.vmem [#allocation10], %s1915_s18 }
  0xa2   : > { %1105 = vmatprep.mubr.msk.f32.mxu0 %vm1658_vm0, %v1659_v1  ;;  %1140 = vmatprep.mubr.msk.f32.mxu1 %vm1658_vm0, %v1659_v1  ;;  %v1943_v5 = vpack.c.bf16 %v432_v3, %v431_v2  ;;  %v448_v6 = vld [vmem:[#allocation8 + $0x8] sm:$0xff]  ;;  %v434_v8 = vld [vmem:[#allocation7 + $0x18] sm:$0xff]  ;;  %v449_v10 = vld [vmem:[#allocation8 + $0x10] sm:$0xff]  ;;  %s782_s21 = sshll.u32 %s415_s19, 4  ;;  %s2023_s28 = scalar_lea.hbm %s2113_s6, %s1001_s15  ;;  %s2025_s21 = int_to_ptr.vmem [resolvable:$true] %s782_s21 }
  0xa3   : > { %v1945_v9 = vpack.c.bf16 %v448_v6, %v447_v4  ;;  %v450_v11 = vld [vmem:[#allocation8 + $0x18] sm:$0xff]  ;;  %v1948_v12 = vpack.c.bf16 %v434_v8, %v433_v7  ;;  %v435_v14 = vld [vmem:[#allocation7 + $0x20] sm:$0xff]  ;;  %v436_v15 = vld [vmem:[#allocation7 + $0x28] sm:$0xff]  ;;  %s763_s16 = scalar_lea.sflag [#allocation4], %s1912_s2  ;;  %s1523_s8 = scalar_lea.vmem %s2025_s21, 128 }
  0xa4   : > { %1215 = vmatpush3.bf16.msra.mxu0 %v1943_v5  ;;  %v1952_v13 = vpack.c.bf16 %v450_v11, %v449_v10  ;;  %v451_v16 = vld [vmem:[#allocation8 + $0x20] sm:$0xff]  ;;  %v452_v17 = vld [vmem:[#allocation8 + $0x28] sm:$0xff]  ;;  %v1956_v18 = vpack.c.bf16 %v436_v15, %v435_v14  ;;  %v437_v20 = vld [vmem:[#allocation7 + $0x30] sm:$0xff]  ;;  %p1524_p1 = scmp.ne.s32.totalorder %s2025_s21, %s1523_s8  ;;  %p2143_p6 = scmp.ne.s32.totalorder %s2134_s14, 0 }
  0xa5   : > { %1239 = vmatpush3.bf16.msra.mxu1 %v1945_v9  ;;  %1216 = vmatprep.subr.bf16.mxu0 %v1657_v0  ;;  %v1960_v19 = vpack.c.bf16 %v452_v17, %v451_v16  ;;  %v438_v21 = vld [vmem:[#allocation7 + $0x38] sm:$0xff]  ;;  %v453_v22 = vld [vmem:[#allocation8 + $0x30] sm:$0xff]  ;;  %v439_v26 = vld [vmem:[#allocation7 + $0x40] sm:$0xff]  ;;  %s1660_s10 = smov [#allocation10]  }
  0xa6   : > { %1240 = vmatprep.subr.bf16.mxu1 %v1657_v0  ;;  %v454_v23 = vld [vmem:[#allocation8 + $0x38] sm:$0xff]  ;;  %v1964_v24 = vpack.c.bf16 %v438_v21, %v437_v20  ;;  %v440_v27 = vld [vmem:[#allocation7 + $0x48] sm:$0xff]  ;;  %v455_v28 = vld [vmem:[#allocation8 + $0x40] sm:$0xff]  ;;  %p1525_p10 = pnand %p1524_p1, %p2143_p6  ;;  %s1527_s23 = sshll.u32 %s1660_s10, 4  ;;  %s1528_s23 = int_to_ptr.vmem [resolvable:$false] %s1527_s23 }
  0xa7   : > { %v1968_v25 = vpack.c.bf16 %v454_v23, %v453_v22  ;;  %v456_v29 = vld [vmem:[#allocation8 + $0x48] sm:$0xff]  ;;  %v1226_v30 = vpack.c.bf16 %v440_v27, %v439_v26  ;;  %v441_v32 = vld [vmem:[#allocation7 + $0x50] sm:$0xff]  ;;  %v442_v33 = vld [vmem:[#allocation7 + $0x58] sm:$0xff]  ;;  %s1529_s20 = scalar_lea.vmem %s1528_s23, 256  ;;  %p1530_p4 = scmp.lt.s32.totalorder %s2025_s21, %s1528_s23 }
  0xa8   : > { %1218 = vmatpush3.bf16.msra.mxu0 %v1948_v12  ;;  %v1250_v31 = vpack.c.bf16 %v456_v29, %v455_v28  ;;  %v457_v34 = vld [vmem:[#allocation8 + $0x50] sm:$0xff]  ;;  %v458_v35 = vld [vmem:[#allocation8 + $0x58] sm:$0xff]  ;;  %v1229_v36 = vpack.c.bf16 %v442_v33, %v441_v32  ;;  %v443_v38 = vld [vmem:[#allocation7 + $0x60] sm:$0xff]  ;;  %p1526_p3 = pneg %p1525_p10  ;;  %p1531_p9 = scmp.lt.s32.totalorder %s1529_s20, %s1523_s8 }
  0xa9   : > { %1242 = vmatpush3.bf16.msra.mxu1 %v1952_v13  ;;  %1219 = vmatprep.subr.bf16.mxu0 %v1657_v0  ;;  %v1253_v37 = vpack.c.bf16 %v458_v35, %v457_v34  ;;  %v444_v39 = vld [vmem:[#allocation7 + $0x68] sm:$0xff]  ;;  %v459_v40 = vld [vmem:[#allocation8 + $0x60] sm:$0xff]  ;;  %v445_v44 = vld [vmem:[#allocation7 + $0x70] sm:$0xff] }
  0xaa   : > { %1243 = vmatprep.subr.bf16.mxu1 %v1657_v0  ;;  %v460_v41 = vld [vmem:[#allocation8 + $0x68] sm:$0xff]  ;;  %v1232_v42 = vpack.c.bf16 %v444_v39, %v443_v38  ;;  %v446_v45 = vld [vmem:[#allocation7 + $0x78] sm:$0xff]  ;;  %v461_v46 = vld [vmem:[#allocation8 + $0x70] sm:$0xff]  ;;  %p1532_p5 = por %p1531_p9, %p1530_p4 }
  0xab   : > { %v1256_v43 = vpack.c.bf16 %v460_v41, %v459_v40  ;;  %v462_v47 = vld [vmem:[#allocation8 + $0x78] sm:$0xff]  ;;  %v1235_v48 = vpack.c.bf16 %v446_v45, %v445_v44  ;;  %v429_v50 = vld [vmem:[%s359_s13] sm:$0xff] }
  0xac   : > { %1221 = vmatpush3.bf16.msra.mxu0 %v1956_v18  ;;  %v1259_v49 = vpack.c.bf16 %v462_v47, %v461_v46  ;;  %v430_v51 = vld [vmem:[%s368_s22] sm:$0xff]  ;;  %v997_v54 = vld [vmem:[%s2111_s4] ss:$0 sm:$0xff]  ;;  %p1533_p7 = pnand %p1532_p5, %p1526_p3 }
  0xad   : > { %1245 = vmatpush3.bf16.msra.mxu1 %v1960_v19  ;;  %1222 = vmatprep.subr.bf16.mxu0 %v1657_v0 }
  0xae   : > { %1246 = vmatprep.subr.bf16.mxu1 %v1657_v0 }
  0xb0   : > { %1224 = vmatpush3.bf16.msra.mxu0 %v1964_v24 }
  0xb1   : > { %1248 = vmatpush3.bf16.msra.mxu1 %v1968_v25  ;;  %1225 = vmatprep.subr.bf16.mxu0 %v1657_v0 }
  0xb2   : > { %1249 = vmatprep.subr.bf16.mxu1 %v1657_v0 }
  0xb4   : > { %1227 = vmatpush3.bf16.msra.mxu0 %v1226_v30 }
  0xb5   : > { %1251 = vmatpush3.bf16.msra.mxu1 %v1250_v31  ;;  %1228 = vmatprep.subr.bf16.mxu0 %v1657_v0 }
  0xb6   : > { %1252 = vmatprep.subr.bf16.mxu1 %v1657_v0 }
  0xb8   : > { %1230 = vmatpush3.bf16.msra.mxu0 %v1229_v36 }
  0xb9   : > { %1254 = vmatpush3.bf16.msra.mxu1 %v1253_v37  ;;  %1231 = vmatprep.subr.bf16.mxu0 %v1657_v0 }
  0xba   : > { %1255 = vmatprep.subr.bf16.mxu1 %v1657_v0 }
  0xbc   : > { %1233 = vmatpush3.bf16.msra.mxu0 %v1232_v42 }
  0xbd   : > { %1257 = vmatpush3.bf16.msra.mxu1 %v1256_v43  ;;  %1234 = vmatprep.subr.bf16.mxu0 %v1657_v0 }
  0xbe   : > { %1258 = vmatprep.subr.bf16.mxu1 %v1657_v0 }
  0xc0   : > { %1236 = vmatpush3.bf16.msra.mxu0 %v1235_v48 }
  0xc1   : > { %1260 = vmatpush3.bf16.msra.mxu1 %v1259_v49  ;;  %1261 = vmatprep.subr.bf16.mxu0 %v1657_v0 }
  0xc2   : > { %1285 = vmatprep.subr.bf16.mxu1 %v1657_v0 }
  0xc3   : > { %1106 = vmatmul.mubr.f32.vlgmr.msra.gmra.mrb[0].mxu0 %v429_v50 }
  0xc4   : > { %1141 = vmatmul.mubr.f32.vlgmr.msra.gmra.mrb[0].mxu1 %v430_v51  ;;  %1263 = vmatpush3.bf16.msra.mxu0 %v1943_v5 }
  0xc5   : > { %1287 = vmatpush3.bf16.msra.mxu1 %v1945_v9  ;;  %1264 = vmatprep.subr.bf16.mxu0 %v1657_v0 }
  0xc6   : > { %1288 = vmatprep.subr.bf16.mxu1 %v1657_v0  ;;  %1175 = vmatprep.mubr.msk.f32.mxu0 %vm1658_vm0, %v1659_v1 }
  0xc7   : > { %1210 = vmatprep.mubr.msk.f32.mxu1 %vm1658_vm0, %v1659_v1 }
  0xc8   : > { %1266 = vmatpush3.bf16.msra.mxu0 %v1948_v12 }
  0xc9   : > { %1290 = vmatpush3.bf16.msra.mxu1 %v1952_v13  ;;  %1267 = vmatprep.subr.bf16.mxu0 %v1657_v0 }
  0xca   : > { %1291 = vmatprep.subr.bf16.mxu1 %v1657_v0 }
  0xcc   : > { %1269 = vmatpush3.bf16.msra.mxu0 %v1956_v18 }
  0xcd   : > { %1293 = vmatpush3.bf16.msra.mxu1 %v1960_v19  ;;  %1270 = vmatprep.subr.bf16.mxu0 %v1657_v0 }
  0xce   : > { %1294 = vmatprep.subr.bf16.mxu1 %v1657_v0 }
  0xd0   : > { %1272 = vmatpush3.bf16.msra.mxu0 %v1964_v24 }
  0xd1   : > { %1296 = vmatpush3.bf16.msra.mxu1 %v1968_v25  ;;  %1273 = vmatprep.subr.bf16.mxu0 %v1657_v0 }
  0xd2   : > { %1297 = vmatprep.subr.bf16.mxu1 %v1657_v0 }
  0xd4   : > { %1275 = vmatpush3.bf16.msra.mxu0 %v1226_v30 }
  0xd5   : > { %1299 = vmatpush3.bf16.msra.mxu1 %v1250_v31  ;;  %1276 = vmatprep.subr.bf16.mxu0 %v1657_v0 }
  0xd6   : > { %1300 = vmatprep.subr.bf16.mxu1 %v1657_v0 }
  0xd8   : > { %1278 = vmatpush3.bf16.msra.mxu0 %v1229_v36 }
  0xd9   : > { %1302 = vmatpush3.bf16.msra.mxu1 %v1253_v37  ;;  %1279 = vmatprep.subr.bf16.mxu0 %v1657_v0 }
  0xda   : > { %1303 = vmatprep.subr.bf16.mxu1 %v1657_v0 }
  0xdc   : > { %1281 = vmatpush3.bf16.msra.mxu0 %v1232_v42 }
  0xdd   : > { %1305 = vmatpush3.bf16.msra.mxu1 %v1256_v43  ;;  %1282 = vmatprep.subr.bf16.mxu0 %v1657_v0 }
  0xde   : > { %1306 = vmatprep.subr.bf16.mxu1 %v1657_v0 }
  0xe0   : > { %1284 = vmatpush3.bf16.msra.mxu0 %v1235_v48 }
  0xe1   : > { %1308 = vmatpush3.bf16.msra.mxu1 %v1259_v49 }
  0xe3   : > { %1176 = vmatmul.mubr.f32.vlgmr.msra.gmra.mrb[2].mxu0 %v430_v51 }
  0xe4   : > { %1211 = vmatmul.mubr.f32.vlgmr.msra.gmra.mrb[2].mxu1 %v429_v50 }
 0x196   : > { %v529_v52 = vpop.f32.mrb[0].mxu0 }
 0x197   : > { %v599_v53 = vpop.f32.mrb[0].mxu1  ;;  %v1107_v55 = vpop.f32.mrb[1].mxu0 }
 0x198   : > { %v603_v56 = vsub.f32 %v529_v52, %v599_v53  ;;  %v1142_v57 = vpop.f32.mrb[1].mxu1 }
 0x19a   : > { %v751_v58 = vadd.f32 %v997_v54, %v603_v56 }
 0x19c   : > { %752 = vst [vmem:[%s415_s19] sm:$0xff] %v751_v58 }
 0x19d   : > { %1536 = shalt.err (!%p1533_p7)
}
 0x19e   : > { %s1537_s13 = scalar_lea.hbm %s2023_s28, 128  ;;  %s1541_s22 = scalar_lea.hbm %s2113_s6, 256 }
 0x19f   : > { %p1538_p13 = scmp.ne.s32.totalorder %s2023_s28, %s1537_s13  ;;  %p1542_p2 = scmp.lt.u32.totalorder %s2023_s28, %s2113_s6 }
 0x1a0   : > { %p1543_p12 = scmp.lt.u32.totalorder %s1541_s22, %s1537_s13  ;;  %p1545_p1 = scmp.lt.u32.totalorder %s1537_s13, %s2023_s28 }
 0x1a1   : > { %p1539_p8 = pnand %p1538_p13, %p2143_p6 }
 0x1a2   : > { %p1544_p0 = por %p1543_p12, %p1542_p2 }
 0x1a3   : > { %p1540_p11 = pneg %p1539_p8 }
 0x1a4   : > { %p1546_p10 = por %p1545_p1, %p1544_p0 }
 0x1a6   : > { %p1547_p3 = pnand %p1546_p10, %p1540_p11 }
 0x1a8   : > { %1550 = shalt.err (!%p1547_p3)
}
 0x1a9   : > { %1321 = dma.vmem_to_hbm [thread:$0]  (%p2143_p6), %s2025_s21, 128, %s2023_s28, %s763_s16   ;;  %v998_v61 = vld [vmem:[%s2112_s5] ss:$0 sm:$0xff] }
 0x1aa   : > { %s422_s12 = scalar_lea.vmem [#allocation11], %s1915_s18  ;;  %s2058_s20 = scalar_lea.hbm %s2114_s7, %s1001_s15 }
 0x1ab   : > { %s796_s8 = sshll.u32 %s422_s12, 4  ;;  %s768_s21 = scalar_lea.sflag [#allocation12], %s1912_s2  ;;  %s2060_s8 = int_to_ptr.vmem [resolvable:$true] %s796_s8 }
 0x1ac   : > { %s1551_s28 = scalar_lea.vmem %s2060_s8, 128  ;;  %s1661_s18 = smov [#allocation11]  }
 0x1ad   : > { %p1552_p4 = scmp.ne.s32.totalorder %s2060_s8, %s1551_s28  ;;  %s1555_s16 = sshll.u32 %s1661_s18, 4  ;;  %s1556_s16 = int_to_ptr.vmem [resolvable:$false] %s1555_s16 }
 0x1ae   : > { %s1557_s27 = scalar_lea.vmem %s1556_s16, 256  ;;  %p1558_p7 = scmp.lt.s32.totalorder %s2060_s8, %s1556_s16 }
 0x1af   : > { %p1553_p9 = pnand %p1552_p4, %p2143_p6  ;;  %p1559_p13 = scmp.lt.s32.totalorder %s1557_s27, %s1551_s28 }
 0x1b1   : > { %p1554_p5 = pneg %p1553_p9  ;;  %p1560_p8 = por %p1559_p13, %p1558_p7 }
 0x1b3   : > { %p1561_p11 = pnand %p1560_p8, %p1554_p5 }
 0x1b6   : > { %v670_v59 = vpop.f32.mrb[2].mxu0 }
 0x1b7   : > { %v740_v60 = vpop.f32.mrb[2].mxu1  ;;  %v1177_v62 = vpop.f32.mrb[3].mxu0 }
 0x1b8   : > { %v741_v63 = vadd.f32 %v740_v60, %v670_v59  ;;  %v1212_v0 = vpop.f32.mrb[3].mxu1 }
 0x1ba   : > { %v760_v1 = vadd.f32 %v998_v61, %v741_v63 }
 0x1bc   : > { %761 = vst [vmem:[%s422_s12] sm:$0xff] %v760_v1 }
 0x1bd   : > { %1564 = shalt.err (!%p1561_p11)
}
 0x1be   : > { %s1565_s2 = scalar_lea.hbm %s2058_s20, 128  ;;  %s1569_s11 = scalar_lea.hbm %s2114_s7, 256 }
 0x1bf   : > { %p1566_p2 = scmp.ne.s32.totalorder %s2058_s20, %s1565_s2  ;;  %p1570_p1 = scmp.lt.u32.totalorder %s2058_s20, %s2114_s7 }
 0x1c0   : > { %p1571_p10 = scmp.lt.u32.totalorder %s1569_s11, %s1565_s2  ;;  %p1573_p4 = scmp.lt.u32.totalorder %s1565_s2, %s2058_s20 }
 0x1c1   : > { %p1567_p12 = pnand %p1566_p2, %p2143_p6 }
 0x1c2   : > { %p1572_p3 = por %p1571_p10, %p1570_p1 }
 0x1c3   : > { %p1568_p0 = pneg %p1567_p12 }
 0x1c4   : > { %p1574_p9 = por %p1573_p4, %p1572_p3 }
 0x1c6   : > { %p1575_p5 = pnand %p1574_p9, %p1568_p0 }
 0x1c8   : > { %1578 = shalt.err (!%p1575_p5)
}
 0x1c9   : > { %1322 = dma.vmem_to_hbm [thread:$0]  (%p2143_p6), %s2060_s8, 128, %s2058_s20, %s768_s21  }
 0x1ca PF: > { %s2144_s30 = sld [smem:[#allocation20_spill]]  ;;  %s808_s9 = sand.u32 1, %s1629_s24  }
 0x1cb   : > { %p2146_p13 = scmp.ge.s32.totalorder %s1649_s29, 2  ;;  %s809_s19 = scalar_lea.sflag [#allocation4], %s808_s9 }
 0x1d0   : > { %p2145_p7 = scmp.ne.s32.totalorder %s2144_s30, 0 }
 0x1d2   : > { %p1340_p8 = pnand %p2146_p13, %p2145_p7 }
 0x1d4   : > { %1620 = dma.done.wait (!%p1340_p8), %s809_s19, 128  }
 0x1d5   : > { %1622 = vsyncadd (!%p1340_p8), %s809_s19, 4294967168  ;;  %s818_s3 = scalar_lea.sflag [#allocation12], %s808_s9 }
 0x1d6   : > { %1624 = dma.done.wait (!%p1340_p8), %s818_s3, 128  }
 0x1d7   : > { %1626 = vsyncadd (!%p1340_p8), %s818_s3, 4294967168  ;;  %s31_s29 = sadd.s32 1, %s1649_s29   ;;  %s2147_s14 = sld [smem:[#allocation22_spill]] }
 0x1d8   : > { %p28_p11 = scmp.ge.s32.totalorder %s31_s29, 4   ;;  %s2148_s27 = sld [smem:[#allocation19_spill]] }
 0x1d9   : > { %s2149_s28 = sld [smem:[#allocation21_spill]]  ;;  %s2150_s24 = smov %s1633_s25 }
 0x1da   : > { %s2151_s25 = smov %s1637_s26  ;;  %30 = sbr.rel (!%p28_p11) target bundleno = 14 (0xe), region = 135 }
 0x1dd   : > { %s2152_s26 = smov %s2147_s14 }
 0x1e1   :  { %823 = vsyncpa [#allocation3], 1 }
 0x1e2   :  { %825 = vsyncpa [#allocation3 + $0x1], 1 }
 0x1e3   :  { %826 = vsyncpa [#allocation6], 1 }
 0x1e4   :  { %828 = vsyncpa [#allocation6 + $0x1], 1 }
 0x1e5   :  { %829 = vsyncpa [#allocation9], 1 }
 0x1e6   :  { %830 = vsyncpa [#allocation4], 1 }
 0x1e7   :  { %832 = vsyncpa [#allocation4 + $0x1], 1 }
 0x1e8   :  { %833 = vsyncpa [#allocation12], 1 }
 0x1e9   :  { %835 = vsyncpa [#allocation12 + $0x1], 1 }

</bundles_post_ra>
